<compile_context>
chip_gen: v6e
topology: v6e:2x2x1
jax: 0.10.0
libtpu: 0.0.40
codegen_flags: <defaults>
</compile_context>

<pallas_src>
import functools
import math

import jax
import jax.numpy as jnp
import numpy as np
from jax import lax
from jax.experimental import pallas as pl
from jax.experimental.pallas import tpu as pltpu

EPS = 1e-5
GROWTH = 12                       # growthRate
GROWTH_PAD = 16                   # per-block slot width (bf16 tile aligned)
_VMEM_LIMIT = 32 * 1024 * 1024    # actual use ~6-10 MiB; headroom, << v7x 64 MiB


def _round_up(x, m):
    return (x + m - 1) // m * m


def _full_spec(shape):
    nd = len(shape)
    return pl.BlockSpec(tuple(shape), lambda *_: (0,) * nd)


# --------------------------- pltpu.roll direction --------------------------- #
# pltpu.roll follows jnp.roll / np.roll semantics (result[i] == x[i - shift]);
# this is resolved at trace time (no probe in the production path).
# verify_roll_semantics() can optionally re-probe the hardware once and flips
# the flag if a libtpu ever disagrees (safety net used by the test harness).
_NP_ROLL_SEMANTICS = True


def verify_roll_semantics():
    global _NP_ROLL_SEMANTICS

    def _k(x_ref, o_ref):
        o_ref[...] = pltpu.roll(x_ref[...], 1, 1)

    x = jnp.broadcast_to(jnp.arange(128, dtype=jnp.float32), (8, 128))
    out = pl.pallas_call(
        _k, out_shape=jax.ShapeDtypeStruct((8, 128), jnp.float32))(x)
    _NP_ROLL_SEMANTICS = bool(out[0, 0] == x[0, -1])


def _shifted_lanes(v, s):
    """r[:, m] = v[:, (m + s) mod M]; wrap-around is masked by the caller."""
    m = v.shape[-1]
    s = s % m
    if s == 0:
        return v
    amount = (m - s) if _NP_ROLL_SEMANTICS else s
    return pltpu.roll(v, amount, 1)


# ------------------------------ kernel helpers ------------------------------ #
def _conv3x3(y_bf, w_bf, cout_pad, W, mask_ref):
    """3x3 'same' conv (zero pad, stride 1) on lane-flattened activations.

    y_bf: (Cin, M) bf16.  w_bf: (9*cout_pad, Cin) bf16, rows grouped by tap
    t = kh*3 + kw.  mask_ref: (8, M) f32 border masks for the 8 non-center
    taps (tap order).  One MXU matmul for all 9 taps, then 9 cheap XLU lane
    rolls + precomputed-mask multiplies on the small (cout_pad, M) partials."""
    p = jnp.dot(w_bf, y_bf, preferred_element_type=jnp.float32)
    acc = None
    j = 0
    for t in range(9):
        oh, ow = t // 3 - 1, t % 3 - 1
        pt = p[t * cout_pad:(t + 1) * cout_pad, :]
        if oh == 0 and ow == 0:
            term = pt
        else:
            term = _shifted_lanes(pt, oh * W + ow) * mask_ref[j:j + 1, :]
            j += 1
        acc = term if acc is None else acc + term
    return acc                                            # (cout_pad, M) f32


def _write_slot(buf, mean_s, rstd_s, row0, vals_f32):
    """Store new channels (bf16) and cache their BN batch statistics.

    Earlier buffer rows never change, so each channel's mean / rsqrt(var+eps)
    is computed exactly once (PyTorch training BN: batch mean, biased var)."""
    rows = vals_f32.shape[0]
    vb = vals_f32.astype(jnp.bfloat16)
    buf[row0:row0 + rows, :] = vb
    v = vb.astype(jnp.float32)                            # stats match storage
    mean = jnp.mean(v, axis=1, keepdims=True)
    var = jnp.mean(jnp.square(v - mean), axis=1, keepdims=True)
    mean_s[row0:row0 + rows, :] = mean
    rstd_s[row0:row0 + rows, :] = lax.rsqrt(var + EPS)


def _bn_relu_cached(buf, mean_s, rstd_s, gamma, beta, cin):
    """BN+ReLU as a single fused FMA using the cached per-channel stats."""
    scale = gamma * rstd_s[0:cin, :]
    shift = beta - mean_s[0:cin, :] * scale
    return jnp.maximum(buf[0:cin, :].astype(jnp.float32) * scale + shift, 0.0)


def _dense_stage(buf, mean_s, rstd_s, first_vals, w_refs, g_ref, b_ref,
                 mask_ref, W):
    _write_slot(buf, mean_s, rstd_s, 0, first_vals)
    for i, w_ref in enumerate(w_refs):
        cin = w_ref.shape[1]                              # c0_pad + 16*i
        y = _bn_relu_cached(buf, mean_s, rstd_s,
                            g_ref[0:cin, i:i + 1], b_ref[0:cin, i:i + 1], cin)
        new = _conv3x3(y.astype(jnp.bfloat16), w_ref[...], GROWTH_PAD, W,
                       mask_ref)
        _write_slot(buf, mean_s, rstd_s, cin, new)


def _transition(buf, mean_s, rstd_s, g_ref, b_ref, col, tw_ref, sel_ref):
    cin = buf.shape[0]
    y = _bn_relu_cached(buf, mean_s, rstd_s,
                        g_ref[0:cin, col:col + 1], b_ref[0:cin, col:col + 1],
                        cin).astype(jnp.bfloat16)
    # avg_pool2d(2) as a matmul with a precomputed 0/0.25 selection matrix;
    # pool and conv1x1 commute exactly, pooling first shrinks the conv GEMM 4x.
    yp = jnp.dot(y, sel_ref[...], preferred_element_type=jnp.float32)
    return jnp.dot(tw_ref[...], yp.astype(jnp.bfloat16),
                   preferred_element_type=jnp.float32)    # (cout_pad, Mo) f32


# ------------------------------- fused kernel ------------------------------- #
def _densenet_kernel(nblk, W1, *refs):
    W2, W3 = W1 // 2, W1 // 4
    it = iter(refs)
    x_ref, stem_ref = next(it), next(it)
    m1_ref, m2_ref, m3_ref = next(it), next(it), next(it)
    g1, b1 = next(it), next(it)
    g2, b2 = next(it), next(it)
    g3, b3 = next(it), next(it)
    w1 = [next(it) for _ in range(nblk)]
    w2 = [next(it) for _ in range(nblk)]
    w3 = [next(it) for _ in range(nblk)]
    tw1, sel1, tw2, sel2 = next(it), next(it), next(it), next(it)
    sg, fcw, fcb = next(it), next(it), next(it)
    out_ref = next(it)
    buf1, buf2, buf3 = next(it), next(it), next(it)
    mean_s, rstd_s = next(it), next(it)

    # ---- stage 1: stem conv + dense block 1 + transition 1 ----
    c0_pad1 = stem_ref.shape[0] // 9
    stem_out = _conv3x3(x_ref[...].astype(jnp.bfloat16), stem_ref[...],
                        c0_pad1, W1, m1_ref)
    _dense_stage(buf1, mean_s, rstd_s, stem_out, w1, g1, b1, m1_ref, W1)
    t1 = _transition(buf1, mean_s, rstd_s, g1, b1, nblk, tw1, sel1)

    # ---- stage 2 + transition 2 ----
    _dense_stage(buf2, mean_s, rstd_s, t1, w2, g2, b2, m2_ref, W2)
    t2 = _transition(buf2, mean_s, rstd_s, g2, b2, nblk, tw2, sel2)

    # ---- stage 3 + classifier head ----
    _dense_stage(buf3, mean_s, rstd_s, t2, w3, g3, b3, m3_ref, W3)
    c3 = buf3.shape[0]
    y = _bn_relu_cached(buf3, mean_s, rstd_s,
                        g3[0:c3, nblk:nblk + 1], b3[0:c3, nblk:nblk + 1],
                        c3).astype(jnp.bfloat16)
    pooled = jnp.dot(y, sg[...], preferred_element_type=jnp.float32)  # (C, N)
    out_ref[...] = (jnp.dot(fcw[...], pooled.astype(jnp.bfloat16),
                            preferred_element_type=jnp.float32) + fcb[...])


# -------------------------- host-built constant maps ------------------------ #
def _border_masks(N, H, W):
    """(8, M) f32 validity masks for the 8 non-center 3x3 taps (tap order)."""
    M = N * H * W
    m = np.arange(M)
    hh = (m % (H * W)) // W
    ww = m % W
    rows = []
    for t in range(9):
        oh, ow = t // 3 - 1, t % 3 - 1
        if oh == 0 and ow == 0:
            continue
        valid = ((hh + oh >= 0) & (hh + oh < H) &
                 (ww + ow >= 0) & (ww + ow < W))
        rows.append(valid.astype(np.float32))
    return jnp.asarray(np.stack(rows, 0))


def _pool2_matrix(N, H, W):
    """(M, Mo) bf16 selection matrix implementing avg_pool2d(2) as a matmul."""
    Ho, Wo = H // 2, W // 2
    M, Mo = N * H * W, N * Ho * Wo
    m = np.arange(M)
    n_im, hw = m // (H * W), m % (H * W)
    col = n_im * (Ho * Wo) + (hw // W // 2) * Wo + (hw % W) // 2
    sel = np.zeros((M, Mo), np.float32)
    sel[m, col] = 0.25                                    # exact in bf16
    return jnp.asarray(sel, dtype=jnp.bfloat16)


def _global_pool_matrix(N, H, W):
    """(M, N) bf16 matrix implementing the global average pool as a matmul."""
    M = N * H * W
    m = np.arange(M)
    sg = np.zeros((M, N), np.float32)
    sg[m, m // (H * W)] = 1.0 / (H * W)                   # 1/64, exact in bf16
    return jnp.asarray(sg, dtype=jnp.bfloat16)


# ------------------------------ forward wrapper ----------------------------- #
def densenet_forward(params, x_nchw):
    N, _, H, W = x_nchw.shape
    H2, W2 = H // 2, W // 2
    H3, W3 = H2 // 2, W2 // 2
    M1, M2, M3 = N * H * W, N * H2 * W2, N * H3 * W3
    nblk = len(params["w1"])

    x = jnp.transpose(x_nchw, (1, 0, 2, 3)).reshape(3, M1).astype(jnp.float32)

    # Trace-time (numpy) constants: no iota/select work inside the kernel.
    m1 = _border_masks(N, H, W)
    m2 = _border_masks(N, H2, W2)
    m3 = _border_masks(N, H3, W3)
    sel1 = _pool2_matrix(N, H, W)
    sel2 = _pool2_matrix(N, H2, W2)
    sg = _global_pool_matrix(N, H3, W3)

    inputs = [x, params["stem_w"], m1, m2, m3,
              params["g1"], params["b1"], params["g2"], params["b2"],
              params["g3"], params["b3"],
              *params["w1"], *params["w2"], *params["w3"],
              params["tw1"], sel1, params["tw2"], sel2,
              sg, params["fc_w"], params["fc_b"]]

    c1 = params["g1"].shape[0]
    c2 = params["g2"].shape[0]
    c3 = params["g3"].shape[0]
    num_classes = params["fc_w"].shape[0]
    out_shape = jax.ShapeDtypeStruct((num_classes, N), jnp.float32)

    kernel = functools.partial(_densenet_kernel, nblk, W)
    logits = pl.pallas_call(
        kernel,
        out_shape=out_shape,
        grid=(1,),
        in_specs=[_full_spec(a.shape) for a in inputs],
        out_specs=_full_spec(out_shape.shape),
        scratch_shapes=[
            pltpu.VMEM((c1, M1), jnp.bfloat16),   # stage-1 feature buffer
            pltpu.VMEM((c2, M2), jnp.bfloat16),   # stage-2 feature buffer
            pltpu.VMEM((c3, M3), jnp.bfloat16),   # stage-3 feature buffer
            pltpu.VMEM((c3, 1), jnp.float32),     # cached BN means (reused)
            pltpu.VMEM((c3, 1), jnp.float32),     # cached BN rsqrt(var+eps)
        ],
        compiler_params=pltpu.CompilerParams(
            dimension_semantics=("arbitrary",),
            vmem_limit_bytes=_VMEM_LIMIT),
    )(*inputs)
    return logits.T                               # (N, num_classes)


# ------------------------------ parameter init ------------------------------ #
def init_params(key, depth=22, growth=12, num_classes=10, compression=1):
    assert (depth - 4) % 3 == 0, "depth should be 3n+4"
    assert growth == GROWTH
    n = (depth - 4) // 3

    c0_1 = 2 * growth                                    # 24
    c_act_1 = c0_1 + n * growth                          # 96
    c0_2 = int(math.floor(c_act_1 // compression))       # 96
    c_act_2 = c0_2 + n * growth                          # 168
    c0_3 = int(math.floor(c_act_2 // compression))       # 168
    c_act_3 = c0_3 + n * growth                          # 240

    keys = iter(jax.random.split(key, 3 * n + 5))

    def pos_map(c0_act, c0_pad, c_act):
        """Padded buffer row of each actual DenseNet channel."""
        pos = []
        for c in range(c_act):
            if c < c0_act:
                pos.append(c)
            else:
                j, r = divmod(c - c0_act, GROWTH)
                pos.append(c0_pad + GROWTH_PAD * j + r)
        return np.asarray(pos)

    def conv3_weight(k, cin_act, cin_pad, cout_act, cout_pad, pos_in):
        std = math.sqrt(2.0 / (9.0 * cout_act))          # PyTorch He init
        wt = std * jax.random.normal(k, (9, cout_act, cin_act), jnp.float32)
        w = jnp.zeros((9, cout_pad, cin_pad), jnp.float32)
        w = w.at[:, :cout_act, pos_in].set(wt)
        return w.reshape(9 * cout_pad, cin_pad).astype(jnp.bfloat16)

    def dense_stage(c0_act):
        c0_pad = _round_up(c0_act, GROWTH_PAD)
        c_end = c0_pad + n * GROWTH_PAD
        ws = []
        for i in range(n):
            cin_act = c0_act + GROWTH * i
            cin_pad = c0_pad + GROWTH_PAD * i
            ws.append(conv3_weight(next(keys), cin_act, cin_pad, GROWTH,
                                   GROWTH_PAD,
                                   pos_map(c0_act, c0_pad, cin_act)))
        # BN affine params packed column-wise: col i = block i, col n = the
        # following BN (transition / head).  BN init: weight=1, bias=0.
        gam = jnp.ones((c_end, n + 1), jnp.float32)
        bet = jnp.zeros((c_end, n + 1), jnp.float32)
        return gam, bet, ws, c0_pad, c_end

    def trans_weight(k, c0_act, c0_pad, cout_act, cout_pad):
        cin_act = c0_act + n * GROWTH
        cin_pad = c0_pad + n * GROWTH_PAD
        pos_in = pos_map(c0_act, c0_pad, cin_act)
        std = math.sqrt(2.0 / cout_act)                  # He init, k = 1
        wt = std * jax.random.normal(k, (cout_act, cin_act), jnp.float32)
        w = jnp.zeros((cout_pad, cin_pad), jnp.float32)
        w = w.at[:cout_act, pos_in].set(wt)
        return w.astype(jnp.bfloat16)

    g1, b1, w1, c0p1, ce1 = dense_stage(c0_1)
    g2, b2, w2, c0p2, ce2 = dense_stage(c0_2)
    g3, b3, w3, c0p3, ce3 = dense_stage(c0_3)

    # Stem: 3x3 conv, 3 -> 24; out-rows padded to the stage-1 initial slot.
    std = math.sqrt(2.0 / (9.0 * c0_1))
    stem = std * jax.random.normal(next(keys), (9, c0_1, 3), jnp.float32)
    stem_w = (jnp.zeros((9, c0p1, 3), jnp.float32).at[:, :c0_1, :].set(stem)
              .reshape(9 * c0p1, 3).astype(jnp.bfloat16))

    tw1 = trans_weight(next(keys), c0_1, c0p1, c0_2, c0p2)
    tw2 = trans_weight(next(keys), c0_2, c0p2, c0_3, c0p3)

    # Final Linear head (PyTorch default Linear init).
    pos3 = pos_map(c0_3, c0p3, c_act_3)
    bound = 1.0 / math.sqrt(c_act_3)
    fcwt = jax.random.uniform(next(keys), (num_classes, c_act_3), jnp.float32,
                              -bound, bound)
    fc_w = (jnp.zeros((num_classes, ce3), jnp.float32).at[:, pos3].set(fcwt)
            .astype(jnp.bfloat16))
    fc_b = jax.random.uniform(next(keys), (num_classes, 1), jnp.float32,
                              -bound, bound)

    return {"stem_w": stem_w,
            "g1": g1, "b1": b1, "w1": w1, "tw1": tw1,
            "g2": g2, "b2": b2, "w2": w2, "tw2": tw2,
            "g3": g3, "b3": b3, "w3": w3,
            "fc_w": fc_w, "fc_b": fc_b}


# ----------------------------------- main ------------------------------------ #
if __name__ == "__main__":
    key = jax.random.PRNGKey(0)
    pkey, xkey = jax.random.split(key)
    params = init_params(pkey, depth=22, growth=12, num_classes=10)
    # CIFAR-sized input: 32x32 is required by the final AvgPool2d(8) after two
    # stride-2 transitions.  NCHW layout, like the PyTorch reference.
    x = jax.random.normal(xkey, (2, 3, 32, 32), jnp.float32)

    # Optional one-time safety net (production path assumes jnp.roll
    # semantics, resolved at trace time).
    verify_roll_semantics()

    fwd = jax.jit(densenet_forward)
    out = fwd(params, x)
    jax.block_until_ready(out)
    assert out.shape == (2, 10) and out.dtype == jnp.float32
    assert bool(jnp.all(jnp.isfinite(out)))
    print("KERNEL_OK")
</pallas_src>

<mosaic_0001>
module attributes {stable_mosaic.version = 11 : i64} {
  func.func @_k(%arg0: memref<8x128xf32, #tpu.memory_space<vmem>>, %arg1: memref<8x128xf32, #tpu.memory_space<vmem>>) attributes {dimension_semantics = [], scalar_prefetch = 0 : i64, scratch_operands = 0 : i64, tpu.core_type = #tpu.core_type<tc>} {
    %c0 = arith.constant 0 : index
    %c0_0 = arith.constant 0 : index
    %0 = vector.load %arg0[%c0, %c0_0] : memref<8x128xf32, #tpu.memory_space<vmem>>, vector<8x128xf32>
    %c1_i32 = arith.constant 1 : i32
    %1 = tpu.dynamic_rotate %0 by %c1_i32 dim 1 : vector<8x128xf32>, i32 -> vector<8x128xf32>
    %c0_1 = arith.constant 0 : index
    %c0_2 = arith.constant 0 : index
    %2 = vector.load %arg1[%c0_1, %c0_2] : memref<8x128xf32, #tpu.memory_space<vmem>>, vector<8x128xf32>
    tpu.vector_store %arg1[%c0_1, %c0_2], %1 {strides = array<i32>} : memref<8x128xf32, #tpu.memory_space<vmem>>, vector<8x128xf32>,
    return
  }
}

</mosaic_0001>

<bundles_post_ra>
// kernel: tpu_custom_call.1
= control target key start
LH: loop header
LB: loop body
LE: loop exit
PB: predicated region body
PF: predicated region fallthrough
CT: control target
= control target key end

     0   :  { %6 = vsyncpa [#allocation3], 0  ;;  %s106_s0 = inlined_call_operand.hbm [shape: f32[8,128], index: 0, kind: input, shape index: {}]   ;;  %s107_s1 = inlined_call_operand.hbm [shape: f32[8,128], index: 1, kind: output, shape index: {}]  }
   0x1   :  { %7 = vsyncpa [#allocation4], 0  ;;  %s87_s6 = smov [#allocation2]  }
   0x2   :  { %s14_s7 = sshll.u32 %s87_s6, 4  ;;  %s15_s7 = int_to_ptr.vmem [resolvable:$true] %s14_s7 }
   0x3   :  { %s51_s8 = scalar_lea.vmem %s15_s7, 128  ;;  %p56_p1 = scmp.lt.s32.totalorder %s15_s7, %s15_s7 }
   0x4   :  { %p52_p0 = scmp.ne.s32.totalorder %s15_s7, %s51_s8  ;;  %p57_p2 = scmp.lt.s32.totalorder %s51_s8, %s51_s8 }
   0x6   :  { %p58_p3 = por %p57_p2, %p56_p1 }
   0x8   :  { %p59_p4 = pnand %p58_p3, %p52_p0 }
   0xa   :  { %62 = shalt.err (!%p59_p4)
}
   0xb   :  { %17 = dma.hbm_to_vmem [thread:$0]  %s106_s0, 128, %s15_s7, [#allocation3]  }
   0xc   :  { %83 = dma.done.wait [#allocation3], 128  }
   0xd   :  { %84 = vsyncadd [#allocation3], 4294967168  ;;  %v21_v0 = vld [vmem:[#allocation2] sm:$0xff]  ;;  %s88_s11 = smov 1   ;;  %s89_s12 = smov [#allocation5]  }
   0xe   :  { %22 = vrot.lane.b32.xlu0 %v21_v0, %s88_s11  ;;  %s31_s13 = sshll.u32 %s89_s12, 4  ;;  %s32_s13 = int_to_ptr.vmem [resolvable:$true] %s31_s13 }
   0xf   :  { %s63_s14 = scalar_lea.vmem %s32_s13, 128  ;;  %p68_p6 = scmp.lt.s32.totalorder %s32_s13, %s32_s13 }
  0x10   :  { %p64_p5 = scmp.ne.s32.totalorder %s32_s13, %s63_s14  ;;  %p69_p7 = scmp.lt.s32.totalorder %s63_s14, %s63_s14 }
  0x12   :  { %p70_p8 = por %p69_p7, %p68_p6 }
  0x14   :  { %p71_p9 = pnand %p70_p8, %p64_p5 }
  0x80   :  { %v23_v1 = vpop.permute.xlu0 %22 }
  0x81   :  { %24 = vst [vmem:[#allocation5] sm:$0xff] %v23_v1 }
  0x82   :  { %74 = shalt.err (!%p71_p9)
}
  0x83   :  { %34 = dma.vmem_to_hbm [thread:$0]  %s32_s13, 128, %s107_s1, [#allocation4]  }
  0x84   :  { %85 = dma.done.wait [#allocation4], 128  }
  0x85   :  { %86 = vsyncadd [#allocation4], 4294967168 }
  0x86   :  { %38 = vsyncpa [#allocation3], 1 }
  0x87   :  { %39 = vsyncpa [#allocation4], 1 }

</bundles_post_ra>
